<compile_context>
chip_gen: v7x
topology: tpu7x:2x2x1
jax: 0.10.0
libtpu: 0.0.40
codegen_flags: <defaults>
</compile_context>

<pallas_src>
import math

import jax
import jax.numpy as jnp
from jax.experimental import pallas as pl
from jax.experimental.pallas import tpu as pltpu


_MAX_TILE_B = 16384  # lane-width cap per grid step; keeps VMEM use to a few MiB


def _round_up(x, m):
    return ((x + m - 1) // m) * m


def _critic_kernel(x_ref, w1_ref, b1_ref, w2_ref, b2_ref, w3t_ref, b3_ref, out_ref):
    # x_ref: (S, TILE_B) with the batch on the lane axis.  Weights are kept in
    # PyTorch (out, in) layout, so each layer is a plain W @ x + b on the MXU.
    x = x_ref[...].astype(jnp.float32)
    h1 = jnp.dot(w1_ref[...], x, preferred_element_type=jnp.float32) + b1_ref[...]
    h1 = jnp.maximum(h1, 0.0)                                # relu(fc1) -> (H, TILE_B)
    h2 = jnp.dot(w2_ref[...], h1, preferred_element_type=jnp.float32) + b2_ref[...]
    h2 = jnp.maximum(h2, 0.0)                                # relu(fc2) -> (H, TILE_B)
    # Value head: (H, 1) column weights broadcast over (H, TILE_B), reduced over
    # sublanes on the VPU/XLU instead of a 1-row MXU matmul + result pop.
    v = jnp.sum(w3t_ref[...] * h2, axis=0, keepdims=True) + b3_ref[...]
    out_ref[...] = v.astype(out_ref.dtype)                   # (1, TILE_B) lane-dense


def critic_forward(state, params, *, tile_b=None, stream_dtype=jnp.float32):
    """state: (B, state_dim); params: dict of PyTorch-layout weights.

    Returns the critic value of shape (B, 1), matching the nn.Module forward.
    `stream_dtype=jnp.bfloat16` halves streamed input HBM bytes (looser parity).
    """
    B, S = state.shape
    w1, b1 = params["w1"], params["b1"]          # (H, S), (H, 1)
    w2, b2 = params["w2"], params["b2"]          # (H, H), (H, 1)
    w3, b3 = params["w3"], params["b3"]          # (1, H), (1, 1)
    H = w1.shape[0]
    w3t = w3.T                                   # (H, 1) column for the VPU head

    # --- batch tile selection: big tiles, but keep >= 2 grid steps (v7x megacore) ---
    Bp128 = _round_up(B, 128)
    if tile_b is None:
        if Bp128 <= 256:
            tile_b = Bp128                                   # tiny batch: one step
        else:
            n_steps = max(2, (Bp128 + _MAX_TILE_B - 1) // _MAX_TILE_B)
            tile_b = _round_up((Bp128 + n_steps - 1) // n_steps, 128)
    tile_b = _round_up(tile_b, 128)                          # lane axis 128-aligned
    Bp = _round_up(max(B, tile_b), tile_b)
    grid = (Bp // tile_b,)

    # Single fused convert+transpose+pad (one HBM pass) instead of zeros + DUS.
    # The pad columns are garbage after ReLU of trained biases, but are sliced
    # off below -- never remove that slice.
    x_t = jnp.pad(state.T.astype(stream_dtype), ((0, 0), (0, Bp - B)))

    itemsize = jnp.dtype(stream_dtype).itemsize
    flops = 2 * Bp * (S * H + H * H + H)
    bytes_accessed = Bp * S * itemsize + Bp * 4 + (H * S + H * H + 3 * H + 1) * 4

    out_t = pl.pallas_call(
        _critic_kernel,
        out_shape=jax.ShapeDtypeStruct((1, Bp), jnp.float32),
        grid=grid,
        in_specs=[
            pl.BlockSpec((S, tile_b), lambda i: (0, i)),     # streamed state tile
            pl.BlockSpec((H, S), lambda i: (0, 0)),          # resident weights/biases
            pl.BlockSpec((H, 1), lambda i: (0, 0)),
            pl.BlockSpec((H, H), lambda i: (0, 0)),
            pl.BlockSpec((H, 1), lambda i: (0, 0)),
            pl.BlockSpec((H, 1), lambda i: (0, 0)),
            pl.BlockSpec((1, 1), lambda i: (0, 0)),
        ],
        out_specs=pl.BlockSpec((1, tile_b), lambda i: (0, i)),
        compiler_params=pltpu.CompilerParams(
            dimension_semantics=("parallel",),               # megacore-shard the batch
            vmem_limit_bytes=32 * 1024 * 1024,               # headroom on v5e's 16 MiB
            # Let XLA fuse the transpose/pad producer of the state operand into
            # the pallas_call instead of materializing an extra HBM copy.
            allow_input_fusion=[True, False, False, False, False, False, False],
        ),
        cost_estimate=pl.CostEstimate(
            flops=flops, transcendentals=0, bytes_accessed=bytes_accessed
        ),
    )(x_t, w1, b1, w2, b2, w3t, b3)

    return out_t[:, :B].T                                    # (B, 1)


def init_critic_params(key, state_dim, hidden_dim):
    """Kaiming-uniform (relu gain) weights, zero biases — matches
    nn.init.kaiming_uniform_(w, nonlinearity='relu'); bound = sqrt(6 / fan_in).
    Weights stay in PyTorch (out, in) layout; biases stored as (out, 1) columns."""
    k1, k2, k3 = jax.random.split(key, 3)

    def kaiming(k, fan_out, fan_in):
        bound = math.sqrt(6.0 / fan_in)
        return jax.random.uniform(
            k, (fan_out, fan_in), dtype=jnp.float32, minval=-bound, maxval=bound
        )

    return {
        "w1": kaiming(k1, hidden_dim, state_dim),
        "b1": jnp.zeros((hidden_dim, 1), jnp.float32),
        "w2": kaiming(k2, hidden_dim, hidden_dim),
        "b2": jnp.zeros((hidden_dim, 1), jnp.float32),
        "w3": kaiming(k3, 1, hidden_dim),
        "b3": jnp.zeros((1, 1), jnp.float32),
    }


def _reference(state, p):
    h1 = jnp.maximum(state @ p["w1"].T + p["b1"][:, 0], 0.0)
    h2 = jnp.maximum(h1 @ p["w2"].T + p["b2"][:, 0], 0.0)
    return h2 @ p["w3"].T + p["b3"][:, 0]


if __name__ == "__main__":
    STATE_DIM, ACTION_DIM, HIDDEN_DIM = 4, 2, 32   # action_dim unused by forward()

    key = jax.random.PRNGKey(0)
    pkey, k1, k2, k3 = jax.random.split(key, 4)
    params = init_critic_params(pkey, STATE_DIM, HIDDEN_DIM)

    # 1) Batch not a multiple of 128 -> padding path, single grid step.
    s_a = jax.random.normal(k1, (200, STATE_DIM), dtype=jnp.float32)
    v_a = jax.block_until_ready(critic_forward(s_a, params))
    assert v_a.shape == (200, 1)
    assert jnp.allclose(v_a, _reference(s_a, params), atol=1e-5, rtol=1e-5)

    # 2) Explicit small tile -> 3-step pipelined batch grid.
    s_b = jax.random.normal(k2, (384, STATE_DIM), dtype=jnp.float32)
    v_b = jax.block_until_ready(critic_forward(s_b, params, tile_b=128))
    assert v_b.shape == (384, 1)
    assert jnp.allclose(v_b, _reference(s_b, params), atol=1e-5, rtol=1e-5)

    # 3) Default tile selection with >= 2 grid steps (megacore path on v7x).
    s_c = jax.random.normal(k3, (1000, STATE_DIM), dtype=jnp.float32)
    v_c = jax.block_until_ready(critic_forward(s_c, params))
    assert v_c.shape == (1000, 1)
    assert jnp.allclose(v_c, _reference(s_c, params), atol=1e-5, rtol=1e-5)

    print("KERNEL_OK")
</pallas_src>

<mosaic_0001>
module attributes {stable_mosaic.version = 11 : i64} {
  func.func @_critic_kernel(%arg0: i32, %arg1: memref<4x256xf32, #tpu.memory_space<vmem>>, %arg2: memref<32x4xf32, #tpu.memory_space<vmem>>, %arg3: memref<32x1xf32, #tpu.memory_space<vmem>>, %arg4: memref<32x32xf32, #tpu.memory_space<vmem>>, %arg5: memref<32x1xf32, #tpu.memory_space<vmem>>, %arg6: memref<32x1xf32, #tpu.memory_space<vmem>>, %arg7: memref<1x1xf32, #tpu.memory_space<vmem>>, %arg8: memref<1x256xf32, #tpu.memory_space<vmem>>) attributes {dimension_semantics = [#tpu.dimension_semantics<parallel>], iteration_bounds = array<i64: 1>, scalar_prefetch = 0 : i64, scratch_operands = 0 : i64, tpu.core_type = #tpu.core_type<tc>, window_params = [{transform_indices = @transform_0, window_bounds = array<i64: 4, 256>}, {pipeline_mode = #tpu.pipeline_mode<synchronous>, transform_indices = @transform_1, window_bounds = array<i64: 32, 4>}, {pipeline_mode = #tpu.pipeline_mode<synchronous>, transform_indices = @transform_2, window_bounds = array<i64: 32, 1>}, {pipeline_mode = #tpu.pipeline_mode<synchronous>, transform_indices = @transform_3, window_bounds = array<i64: 32, 32>}, {pipeline_mode = #tpu.pipeline_mode<synchronous>, transform_indices = @transform_4, window_bounds = array<i64: 32, 1>}, {pipeline_mode = #tpu.pipeline_mode<synchronous>, transform_indices = @transform_5, window_bounds = array<i64: 32, 1>}, {pipeline_mode = #tpu.pipeline_mode<synchronous>, transform_indices = @transform_6, window_bounds = array<i64: 1, 1>}, {transform_indices = @transform_7, window_bounds = array<i64: 1, 256>}]} {
    %c0 = arith.constant 0 : index
    %c0_0 = arith.constant 0 : index
    %0 = vector.load %arg1[%c0, %c0_0] : memref<4x256xf32, #tpu.memory_space<vmem>>, vector<4x256xf32>
    %c0_1 = arith.constant 0 : index
    %c0_2 = arith.constant 0 : index
    %1 = vector.load %arg2[%c0_1, %c0_2] : memref<32x4xf32, #tpu.memory_space<vmem>>, vector<32x4xf32>
    %cst = arith.constant dense<0.000000e+00> : vector<32x256xf32>
    %2 = tpu.matmul %1, %0, %cst {dimension_numbers = #tpu.dot_dimension_numbers<[1], [0], [0], [1], [0, 0, 1, 1], [], []>} : vector<32x4xf32>, vector<4x256xf32>, vector<32x256xf32> -> vector<32x256xf32>
    %c0_3 = arith.constant 0 : index
    %c0_4 = arith.constant 0 : index
    %3 = vector.load %arg3[%c0_3, %c0_4] : memref<32x1xf32, #tpu.memory_space<vmem>>, vector<32x1xf32>
    %4 = vector.broadcast %3 : vector<32x1xf32> to vector<32x256xf32>
    %5 = arith.addf %2, %4 : vector<32x256xf32>
    %cst_5 = arith.constant 0.000000e+00 : f32
    %6 = vector.broadcast %cst_5 : f32 to vector<32x256xf32>
    %7 = arith.maximumf %5, %6 : vector<32x256xf32>
    %c0_6 = arith.constant 0 : index
    %c0_7 = arith.constant 0 : index
    %8 = vector.load %arg4[%c0_6, %c0_7] : memref<32x32xf32, #tpu.memory_space<vmem>>, vector<32x32xf32>
    %cst_8 = arith.constant dense<0.000000e+00> : vector<32x256xf32>
    %9 = tpu.matmul %8, %7, %cst_8 {dimension_numbers = #tpu.dot_dimension_numbers<[1], [0], [0], [1], [0, 0, 1, 1], [], []>} : vector<32x32xf32>, vector<32x256xf32>, vector<32x256xf32> -> vector<32x256xf32>
    %c0_9 = arith.constant 0 : index
    %c0_10 = arith.constant 0 : index
    %10 = vector.load %arg5[%c0_9, %c0_10] : memref<32x1xf32, #tpu.memory_space<vmem>>, vector<32x1xf32>
    %11 = vector.broadcast %10 : vector<32x1xf32> to vector<32x256xf32>
    %12 = arith.addf %9, %11 : vector<32x256xf32>
    %cst_11 = arith.constant 0.000000e+00 : f32
    %13 = vector.broadcast %cst_11 : f32 to vector<32x256xf32>
    %14 = arith.maximumf %12, %13 : vector<32x256xf32>
    %c0_12 = arith.constant 0 : index
    %c0_13 = arith.constant 0 : index
    %15 = vector.load %arg6[%c0_12, %c0_13] : memref<32x1xf32, #tpu.memory_space<vmem>>, vector<32x1xf32>
    %16 = vector.broadcast %15 : vector<32x1xf32> to vector<32x256xf32>
    %17 = arith.mulf %16, %14 : vector<32x256xf32>
    %cst_14 = arith.constant dense<0.000000e+00> : vector<256xf32>
    %18 = vector.multi_reduction <add>, %17, %cst_14 [0] : vector<32x256xf32> to vector<256xf32>
    %19 = vector.shape_cast %18 : vector<256xf32> to vector<1x256xf32>
    %c0_15 = arith.constant 0 : index
    %c0_16 = arith.constant 0 : index
    %20 = vector.load %arg7[%c0_15, %c0_16] : memref<1x1xf32, #tpu.memory_space<vmem>>, vector<1x1xf32>
    %21 = vector.broadcast %20 : vector<1x1xf32> to vector<1x256xf32>
    %22 = arith.addf %19, %21 : vector<1x256xf32>
    %c0_17 = arith.constant 0 : index
    %c0_18 = arith.constant 0 : index
    %23 = vector.load %arg8[%c0_17, %c0_18] : memref<1x256xf32, #tpu.memory_space<vmem>>, vector<1x256xf32>
    tpu.vector_store %arg8[%c0_17, %c0_18], %22 {strides = array<i32>} : memref<1x256xf32, #tpu.memory_space<vmem>>, vector<1x256xf32>,
    return
  }
  func.func @transform_0(%arg0: i32) -> (i32, i32) {
    %c0_i32 = arith.constant 0 : i32
    %c0_i32_0 = arith.constant 0 : i32
    return %c0_i32, %arg0 : i32, i32
  }
  func.func @transform_1(%arg0: i32) -> (i32, i32) {
    %c0_i32 = arith.constant 0 : i32
    %c0_i32_0 = arith.constant 0 : i32
    %c0_i32_1 = arith.constant 0 : i32
    return %c0_i32, %c0_i32_0 : i32, i32
  }
  func.func @transform_2(%arg0: i32) -> (i32, i32) {
    %c0_i32 = arith.constant 0 : i32
    %c0_i32_0 = arith.constant 0 : i32
    %c0_i32_1 = arith.constant 0 : i32
    return %c0_i32, %c0_i32_0 : i32, i32
  }
  func.func @transform_3(%arg0: i32) -> (i32, i32) {
    %c0_i32 = arith.constant 0 : i32
    %c0_i32_0 = arith.constant 0 : i32
    %c0_i32_1 = arith.constant 0 : i32
    return %c0_i32, %c0_i32_0 : i32, i32
  }
  func.func @transform_4(%arg0: i32) -> (i32, i32) {
    %c0_i32 = arith.constant 0 : i32
    %c0_i32_0 = arith.constant 0 : i32
    %c0_i32_1 = arith.constant 0 : i32
    return %c0_i32, %c0_i32_0 : i32, i32
  }
  func.func @transform_5(%arg0: i32) -> (i32, i32) {
    %c0_i32 = arith.constant 0 : i32
    %c0_i32_0 = arith.constant 0 : i32
    %c0_i32_1 = arith.constant 0 : i32
    return %c0_i32, %c0_i32_0 : i32, i32
  }
  func.func @transform_6(%arg0: i32) -> (i32, i32) {
    %c0_i32 = arith.constant 0 : i32
    %c0_i32_0 = arith.constant 0 : i32
    %c0_i32_1 = arith.constant 0 : i32
    return %c0_i32, %c0_i32_0 : i32, i32
  }
  func.func @transform_7(%arg0: i32) -> (i32, i32) {
    %c0_i32 = arith.constant 0 : i32
    %c0_i32_0 = arith.constant 0 : i32
    return %c0_i32, %arg0 : i32, i32
  }
}

</mosaic_0001>

<bundles_post_ra>
// kernel: tpu_custom_call.1
= control target key start
LH: loop header
LB: loop body
LE: loop exit
PB: predicated region body
PF: predicated region fallthrough
CT: control target
= control target key end

     0   :  { %s595_s0 = inlined_call_operand.vmem [shape: f32[4,256], index: 0, kind: input, shape index: {}]   ;;  %s596_s1 = inlined_call_operand.vmem [shape: f32[32,4], index: 1, kind: input, shape index: {}]   ;;  %s597_s2 = inlined_call_operand.vmem [shape: f32[32,1], index: 2, kind: input, shape index: {}]   ;;  %s598_s3 = inlined_call_operand.vmem [shape: f32[32,32], index: 3, kind: input, shape index: {}]   ;;  %s599_s4 = inlined_call_operand.vmem [shape: f32[32,1], index: 4, kind: input, shape index: {}]   ;;  %s600_s5 = inlined_call_operand.vmem [shape: f32[32,1], index: 5, kind: input, shape index: {}]   ;;  %s601_s6 = inlined_call_operand.<no memory space> [shape: f32[1,1], index: 6, kind: input, shape index: {}]   ;;  %s602_s7 = inlined_call_operand.hbm [shape: f32[1,256], index: 7, kind: output, shape index: {}]  }
   0x1   :  { %v12_v0 = vstv %s601_s6 }
   0x2   :  { %13 = vst [vmem:[#allocation2] sm:$0x1] %v12_v0 }
   0x3   :  { %v29_v1 = vld [vmem:[%s595_s0] sm:$0xff]  ;;  %vm73_vm0 = vcmask 1043456   ;;  %v461_v3 = vmov 0.0   ;;  %vm60_vm1 = vcmask 31744   ;;  %v462_v6 = vmov 0   ;;  %v36_v7 = vld [vmem:[%s597_s2 + $0x10] sm:$0xff] }
   0x4   :  { %v59_v2 = vcombine.high %v29_v1, %v29_v1  ;;  %142 = vmatprep.mubr.f32.mxu0 %v461_v3  ;;  %v34_v4 = vld [vmem:[%s597_s2] sm:$0xff]  ;;  %280 = vmatprep.mubr.f32.mxu1 %v461_v3  ;;  %v35_v8 = vld [vmem:[%s597_s2 + $0x8] sm:$0xff]  ;;  %v37_v9 = vld [vmem:[%s597_s2 + $0x18] sm:$0xff] }
   0x5   :  { %v30_v5 = vld [vmem:[%s596_s1] sm:$0xff]  ;;  %434 = vset.pattern.permute.xlu0 %v462_v6  ;;  %435 = vset.pattern.permute.xlu1 %v462_v6  ;;  %v31_v10 = vld [vmem:[%s596_s1 + $0x8] sm:$0xff] }
   0x6   :  { %412 = vmatprep.subr.msk.mxu0 %vm73_vm0, %v59_v2  ;;  %40 = vperm.xlu0 %434, %v34_v4  }
   0x7   :  { %413 = vmatpush1.msk.msra.mxu0 %vm73_vm0, %v29_v1  ;;  %50 = vperm.xlu1 %435, %v36_v7  }
   0x8   :  { %414 = vmatmul.mubr.msk.f32.vlgmr.msra.gmra.mrb[0].mxu0 %vm60_vm1, %v30_v5 }
   0x9   :  { %148 = vmatprep.mubr.f32.mxu0 %v461_v3 }
   0xa   :  { %14 = vsyncpa [#allocation4], 0  ;;  %45 = vperm.xlu0 %434, %v35_v8   ;;  %v179_v11 = vld [vmem:[%s599_s4] sm:$0xff]  ;;  %v180_v12 = vld [vmem:[%s599_s4 + $0x8] sm:$0xff]  ;;  %vm203_vm2 = vcmask 261120  }
   0xb   :  { %55 = vperm.xlu1 %435, %v37_v9   ;;  %v32_v13 = vld [vmem:[%s596_s1 + $0x10] sm:$0xff]  ;;  %v182_v15 = vld [vmem:[%s599_s4 + $0x18] sm:$0xff]  ;;  %v313_v17 = vld [vmem:[%s600_s5] sm:$0xff] }
   0xc   :  { %415 = vmatmul.mubr.msk.f32.gmra.mrb[2].mxu0 %vm60_vm1, %v31_v10  ;;  %v181_v14 = vld [vmem:[%s599_s4 + $0x10] sm:$0xff]  ;;  %v33_v16 = vld [vmem:[%s596_s1 + $0x18] sm:$0xff]  ;;  %v314_v18 = vld [vmem:[%s600_s5 + $0x8] sm:$0xff] }
   0xd   :  { %154 = vmatprep.mubr.f32.mxu0 %v461_v3  ;;  %v315_v19 = vld [vmem:[%s600_s5 + $0x10] sm:$0xff]  ;;  %v316_v20 = vld [vmem:[%s600_s5 + $0x18] sm:$0xff]  ;;  %v363_v21 = vld [vmem:[#allocation2] sm:$0x1] }
   0xe   :  { %185 = vperm.xlu0 %434, %v179_v11   ;;  %v175_v54 = vld [vmem:[%s598_s3] sm:$0xff]  ;;  %v176_v55 = vld [vmem:[%s598_s3 + $0x8] sm:$0xff]  ;;  %v177_v56 = vld [vmem:[%s598_s3 + $0x10] sm:$0xff] }
   0xf   :  { %190 = vperm.xlu1 %435, %v180_v12   ;;  %v178_v57 = vld [vmem:[%s598_s3 + $0x18] sm:$0xff]  ;;  %s464_s3 = smov [#allocation3]  }
  0x10   :  { %416 = vmatmul.mubr.msk.f32.gmra.mrb[4].mxu0 %vm60_vm1, %v32_v13  ;;  %s404_s14 = sshll.u32 %s464_s3, 4  ;;  %s405_s14 = int_to_ptr.vmem [resolvable:$true] %s404_s14 }
  0x11   :  { %160 = vmatprep.mubr.f32.mxu0 %v461_v3  ;;  %s437_s15 = scalar_lea.vmem %s405_s14, 32  ;;  %p442_p1 = scmp.lt.s32.totalorder %s405_s14, %s405_s14 }
  0x12   :  { %195 = vperm.xlu0 %434, %v181_v14   ;;  %p438_p0 = scmp.ne.s32.totalorder %s405_s14, %s437_s15  ;;  %p443_p2 = scmp.lt.s32.totalorder %s437_s15, %s437_s15 }
  0x13   :  { %200 = vperm.xlu1 %435, %v182_v15  }
  0x14   :  { %417 = vmatmul.mubr.msk.f32.gmra.mrb[6].mxu0 %vm60_vm1, %v33_v16  ;;  %p444_p3 = por %p443_p2, %p442_p1 }
  0x16   :  { %319 = vperm.xlu0 %434, %v313_v17   ;;  %p445_p4 = pnand %p444_p3, %p438_p0 }
  0x17   :  { %324 = vperm.xlu1 %435, %v314_v18  }
  0x1a   :  { %329 = vperm.xlu0 %434, %v315_v19  }
  0x1b   :  { %334 = vperm.xlu1 %435, %v316_v20  }
  0x1e   :  { %366 = vperm.xlu0 %434, %v363_v21  }
  0x85   :  { %v41_v22 = vpop.permute.xlu0 %40 }
  0x86   :  { %v51_v31 = vpop.permute.xlu1 %50 }
  0x89   :  { %v46_v26 = vpop.permute.xlu0 %45 }
  0x8a   :  { %v56_v42 = vpop.permute.xlu1 %55 }
  0x8d   :  { %v186_v58 = vpop.permute.xlu0 %185 }
  0x8e   :  { %v191_v59 = vpop.permute.xlu1 %190 }
  0x91   :  { %v196_v60 = vpop.permute.xlu0 %195 }
  0x92   :  { %v201_v0 = vpop.permute.xlu1 %200 }
  0x95   :  { %v320_v7 = vpop.permute.xlu0 %319 }
  0x96   :  { %v325_v10 = vpop.permute.xlu1 %324 }
  0xdb   :  { %v144_v23 = vpop.f32.mrb[0].mxu0 }
  0xdc   :  { %v146_v24 = vpop.f32.mrb[1].mxu0  ;;  %v145_v25 = vadd.f32 %v144_v23, %v41_v22 }
  0xdd   :  { %v147_v27 = vadd.f32 %v146_v24, %v41_v22  ;;  %v330_v22 = vpop.permute.xlu0 %329 }
  0xde   :  { %v167_v33 = vmax.f32 %v145_v25, 0.0 }
  0xdf   :  { %v150_v28 = vpop.f32.mrb[2].mxu0  ;;  %v168_v35 = vmax.f32 %v147_v27, 0.0 }
  0xe0   :  { %v151_v29 = vadd.f32 %v150_v28, %v46_v26  ;;  %v152_v30 = vpop.f32.mrb[3].mxu0 }
  0xe1   :  { %v153_v32 = vadd.f32 %v152_v30, %v46_v26 }
  0xe2   :  { %v169_v34 = vmax.f32 %v151_v29, 0.0 }
  0xe3   :  { %v170_v36 = vmax.f32 %v153_v32, 0.0  ;;  %v156_v37 = vpop.f32.mrb[4].mxu0 }
  0xe4   :  { %v158_v38 = vpop.f32.mrb[5].mxu0  ;;  %v424_v39 = vpack.c.bf16 %v169_v34, %v167_v33  ;;  %v157_v41 = vadd.f32 %v156_v37, %v51_v31  ;;  %v335_v33 = vpop.permute.xlu1 %334 }
  0xe5   :  { %v422_v40 = vpack.c.bf16 %v170_v36, %v168_v35  ;;  %v159_v43 = vadd.f32 %v158_v38, %v51_v31  ;;  %v369_v38 = vlaneseq }
  0xe6   :  { %v171_v48 = vmax.f32 %v157_v41, 0.0 }
  0xe7   :  { %v162_v44 = vpop.f32.mrb[6].mxu0  ;;  %423 = vmatprep.subr.bf16.mxu1 %v422_v40  ;;  %v172_v50 = vmax.f32 %v159_v43, 0.0  ;;  %v370_v43 = vshrl.u32 %v369_v38, 7  ;;  %vm395_vm3 = vcmp.lt.s32.totalorder %v369_v38, 256 }
  0xe8   :  { %v163_v45 = vadd.f32 %v162_v44, %v56_v42  ;;  %v164_v46 = vpop.f32.mrb[7].mxu0  ;;  %425 = vmatpush1.bf16.msra.mxu1 %v424_v39 }
  0xe9   :  { %v165_v47 = vadd.f32 %v164_v46, %v56_v42 }
  0xea   :  { %v173_v49 = vmax.f32 %v163_v45, 0.0 }
  0xeb   :  { %v174_v51 = vmax.f32 %v165_v47, 0.0 }
  0xec   :  { %v428_v52 = vpack.c.bf16 %v173_v49, %v171_v48  ;;  %v463_v48 = vmov 1966171168  }
  0xed   :  { %v426_v53 = vpack.c.bf16 %v174_v51, %v172_v50  ;;  %v379_v49 = vunpack.c.l.s4 %v463_v48  ;;  %v371_v50 = vsub.s32 0, %v370_v43 }
  0xef   :  { %427 = vmatprep.subr.bf16.mxu1 %v426_v53 }
  0xf0   :  { %429 = vmatpush1.bf16.msra.mxu1 %v428_v52  ;;  %v367_v52 = vpop.permute.xlu0 %366 }
  0xf3   :  { %418 = vmatmul.mubr.msk.f32.vlgmr.msra.gmra.mrb[0].mxu1 %vm203_vm2, %v175_v54 }
  0xf4   :  { %286 = vmatprep.mubr.f32.mxu1 %v461_v3 }
  0xf7   :  { %419 = vmatmul.mubr.msk.f32.gmra.mrb[2].mxu1 %vm203_vm2, %v176_v55 }
  0xf8   :  { %292 = vmatprep.mubr.f32.mxu1 %v461_v3 }
  0xfb   :  { %420 = vmatmul.mubr.msk.f32.gmra.mrb[4].mxu1 %vm203_vm2, %v177_v56  ;;  %v380_v56 = vunpack.c.0.s8 %v379_v49 }
  0xfc   :  { %298 = vmatprep.mubr.f32.mxu1 %v461_v3 }
  0xff   :  { %421 = vmatmul.mubr.msk.f32.gmra.mrb[6].mxu1 %vm203_vm2, %v178_v57  ;;  %v372_v57 = vrot.slane %v367_v52, %v371_v50 }
 0x1c6   :  { %v282_v61 = vpop.f32.mrb[0].mxu1 }
 0x1c7   :  { %v283_v62 = vadd.f32 %v282_v61, %v186_v58  ;;  %v284_v63 = vpop.f32.mrb[1].mxu1 }
 0x1c8   :  { %v285_v1 = vadd.f32 %v284_v63, %v186_v58 }
 0x1c9   :  { %v305_v4 = vmax.f32 %v283_v62, 0.0  ;;  %v383_v62 = vsub.s32 %v380_v56, %v370_v43 }
 0x1ca   :  { %v288_v2 = vpop.f32.mrb[2].mxu1  ;;  %v306_v8 = vmax.f32 %v285_v1, 0.0 }
 0x1cb   :  { %v289_v5 = vadd.f32 %v288_v2, %v191_v59  ;;  %v290_v6 = vpop.f32.mrb[3].mxu1  ;;  %v337_v13 = vmul.f32 %v320_v7, %v305_v4 }
 0x1cc   :  { %v291_v3 = vadd.f32 %v290_v6, %v191_v59  ;;  %v338_v17 = vmul.f32 %v320_v7, %v306_v8 }
 0x1cd   :  { %v307_v9 = vmax.f32 %v289_v5, 0.0 }
 0x1ce   :  { %v308_v11 = vmax.f32 %v291_v3, 0.0  ;;  %v294_v12 = vpop.f32.mrb[4].mxu1 }
 0x1cf   :  { %v339_v14 = vmul.f32 %v325_v10, %v307_v9  ;;  %v295_v15 = vadd.f32 %v294_v12, %v196_v60  ;;  %v296_v16 = vpop.f32.mrb[5].mxu1 }
 0x1d0   :  { %v340_v18 = vmul.f32 %v325_v10, %v308_v11  ;;  %v297_v19 = vadd.f32 %v296_v16, %v196_v60 }
 0x1d1   :  { %v345_v20 = vadd.f32 %v339_v14, %v337_v13  ;;  %v309_v21 = vmax.f32 %v295_v15, 0.0 }
 0x1d2   :  { %v354_v23 = vadd.f32 %v340_v18, %v338_v17  ;;  %v310_v24 = vmax.f32 %v297_v19, 0.0  ;;  %v300_v25 = vpop.f32.mrb[6].mxu1 }
 0x1d3   :  { %v341_v26 = vmul.f32 %v330_v22, %v309_v21  ;;  %v301_v27 = vadd.f32 %v300_v25, %v201_v0  ;;  %v302_v28 = vpop.f32.mrb[7].mxu1 }
 0x1d4   :  { %v342_v29 = vmul.f32 %v330_v22, %v310_v24  ;;  %v303_v30 = vadd.f32 %v302_v28, %v201_v0 }
 0x1d5   :  { %v346_v31 = vadd.f32 %v345_v20, %v341_v26  ;;  %v311_v32 = vmax.f32 %v301_v27, 0.0 }
 0x1d6   :  { %v355_v34 = vadd.f32 %v354_v23, %v342_v29  ;;  %v312_v35 = vmax.f32 %v303_v30, 0.0 }
 0x1d7   :  { %v343_v36 = vmul.f32 %v335_v33, %v311_v32 }
 0x1d8   :  { %v344_v37 = vmul.f32 %v335_v33, %v312_v35 }
 0x1d9   :  { %v347_v39 = vadd.f32 %v346_v31, %v343_v36 }
 0x1da   :  { %v356_v40 = vadd.f32 %v355_v34, %v344_v37 }
 0x1db   :  { %v348_v41 = vrot.slane %v347_v39, 4 }
 0x1dc   :  { %v357_v42 = vrot.slane %v356_v40, 4 }
 0x1dd   :  { %v349_v44 = vadd.f32 %v348_v41, %v347_v39 }
 0x1de   :  { %v358_v45 = vadd.f32 %v357_v42, %v356_v40 }
 0x1df   :  { %v350_v46 = vrot.slane %v349_v44, 2 }
 0x1e0   :  { %v359_v47 = vrot.slane %v358_v45, 2 }
 0x1e1   :  { %v351_v51 = vadd.f32 %v350_v46, %v349_v44 }
 0x1e2   :  { %v360_v53 = vadd.f32 %v359_v47, %v358_v45 }
 0x1e3   :  { %v352_v54 = vrot.slane %v351_v51, 1 }
 0x1e4   :  { %v361_v55 = vrot.slane %v360_v53, 1 }
 0x1e5   :  { %v353_v58 = vadd.f32 %v352_v54, %v351_v51 }
 0x1e6   :  { %v362_v59 = vadd.f32 %v361_v55, %v360_v53 }
 0x1e7   :  { %v373_v60 = vadd.f32 %v372_v57, %v353_v58 }
 0x1e8   :  { %v374_v61 = vadd.f32 %v372_v57, %v362_v59 }
 0x1ea   :  { %v377_v63 = vcombine.low %v373_v60, %v374_v61 }
 0x1ec   :  { %v384_v0 = vrot.slane %v377_v63, %v383_v62 }
 0x1ee   :  { %v391_v1 = vrot.slane %v384_v0, %v383_v62 }
 0x1f0   :  { %397 = vst.msk [vmem:[#allocation3] sm:$0x3] %vm395_vm3, %v391_v1 }
 0x1f1   :  { %448 = shalt.err (!%p445_p4)
}
 0x1f2   :  { %s449_s18 = scalar_lea.hbm %s602_s7, 32 }
 0x1f3   :  { %p450_p5 = scmp.ne.s32.totalorder %s602_s7, %s449_s18  ;;  %p453_p6 = scmp.lt.u32.totalorder %s449_s18, %s602_s7 }
 0x1f5   :  { %p455_p7 = pnand %p453_p6, %p450_p5 }
 0x1f7   :  { %458 = shalt.err (!%p455_p7)
}
 0x1f8   :  { %407 = dma.vmem_to_hbm [thread:$0]  %s405_s14, 32, %s602_s7, [#allocation4]  }
 0x1f9   :  { %459 = dma.done.wait [#allocation4], 32  }
 0x1fa   :  { %460 = vsyncadd [#allocation4], 4294967264 }
 0x1fb   :  { %411 = vsyncpa [#allocation4], 1 }

</bundles_post_ra>
